<compile_context>
chip_gen: v5e
topology: v5e:2x2
jax: 0.10.0
libtpu: 0.0.40
codegen_flags: <defaults>
</compile_context>

<pallas_src>
import functools

import jax
import jax.numpy as jnp
from jax import lax
from jax.experimental import pallas as pl
from jax.experimental.pallas import tpu as pltpu


def _round_up(v, m):
    return (v + m - 1) // m * m


def _vmem_capacity_bytes():
    try:
        info = pltpu.get_tpu_info()
        cap = getattr(info, "vmem_capacity_bytes", None)
        if cap:
            return int(cap)
    except Exception:
        pass
    return 128 * 1024 * 1024


@functools.lru_cache(maxsize=1)
def _buffered_weights_supported():
    """One-time probe: can constant-index weight blocks be single-buffered?"""
    if not hasattr(pl, "Buffered"):
        return False

    def _probe(x_ref, o_ref):
        o_ref[...] = x_ref[...] + 1.0

    try:
        fn = pl.pallas_call(
            _probe,
            out_shape=jax.ShapeDtypeStruct((8, 128), jnp.float32),
            grid=(1,),
            in_specs=[pl.BlockSpec((8, 128), lambda i: (0, 0),
                                   pipeline_mode=pl.Buffered(1))],
            out_specs=pl.BlockSpec((8, 128), lambda i: (0, 0)),
        )
        jax.block_until_ready(fn(jnp.zeros((8, 128), jnp.float32)))
        return True
    except Exception:
        return False


def _mamba_block_kernel(x_ref, halo_ref, ln_g_ref, ln_b_ref, w_in1_ref, w_in2_ref,
                        conv_w_ref, w_dt_ref, b_dt_ref, w_out_ref, scale_ref,
                        out_ref, *, d_model, seq_len, tile_l, mask_rows):
    l = pl.program_id(1)
    x = x_ref[0]                                  # (tile_l, D_pad) f32 (residual)

    # LayerNorm over the real d_model features. Padded lanes of x are zero and
    # gamma/beta padded lanes are zero, so sums over the padded width divided by
    # d_model are exact and padded output lanes stay exactly zero.
    inv_d = 1.0 / d_model
    mu = jnp.sum(x, axis=-1, keepdims=True) * inv_d
    ms = jnp.sum(x * x, axis=-1, keepdims=True) * inv_d
    xn = (x - mu) * lax.rsqrt(ms - mu * mu + 1e-5) * ln_g_ref[...] + ln_b_ref[...]

    # in_proj (split into the two halves -> no misaligned column slice)
    xn_b = xn.astype(jnp.bfloat16)
    x1 = jnp.dot(xn_b, w_in1_ref[...], preferred_element_type=jnp.float32)
    # take sigmoid immediately so only the gate (not x2) stays live downstream
    g2 = jax.nn.sigmoid(jnp.dot(xn_b, w_in2_ref[...],
                                preferred_element_type=jnp.float32))

    if mask_rows:
        # rows past the real sequence length must look like the conv's zero pad
        row = lax.broadcasted_iota(jnp.int32, (tile_l, 1), 0)
        x1 = jnp.where((l * tile_l + row) < seq_len, x1, 0.0)

    # depthwise Conv1d (k=3, pad=1, groups=d_inner): neighbour rows inside the
    # tile plus the pre-computed halo x1 rows (row 0 = x1[t0-1], row 1 = x1[t0+tile_l])
    xh1 = halo_ref[0, 0]                          # (8, Di_pad) f32
    prev = jnp.concatenate([xh1[0:1, :], x1[:-1, :]], axis=0)
    nxt = jnp.concatenate([x1[1:, :], xh1[1:2, :]], axis=0)
    w = conv_w_ref[...]                           # (3, Di_pad) f32
    x1_conv = prev * w[0:1, :] + x1 * w[1:2, :] + nxt * w[2:3, :]

    # SiLU
    x1_ssm = x1_conv * jax.nn.sigmoid(x1_conv)

    # dt_proj + fused sigmoid(softplus(dt)) == (1+e)/(2+e) with e = exp(dt)
    dt = jnp.dot(x1_ssm.astype(jnp.bfloat16), w_dt_ref[...],
                 preferred_element_type=jnp.float32) + b_dt_ref[...]
    e = jnp.exp(jnp.minimum(dt, 30.0))            # clamp keeps (1+e)/(2+e) finite
    x_gated = x1_ssm * ((1.0 + e) / (2.0 + e)) * g2

    # out_proj + layer_scale + residual (dropout is identity in eval)
    out = jnp.dot(x_gated.astype(jnp.bfloat16), w_out_ref[...],
                  preferred_element_type=jnp.float32)
    out_ref[0] = out * scale_ref[...] + x


def _make_kernel_fn(*, B, n_l, tile_l, L_pad, D_pad, Di_pad, d_model, seq_len,
                    vmem_limit, single_buffer_weights):
    kernel = functools.partial(
        _mamba_block_kernel,
        d_model=d_model, seq_len=seq_len, tile_l=tile_l,
        mask_rows=(L_pad != seq_len))

    def wspec(shape):
        # constant-index (resident) weight blocks: request single buffering so
        # weights are not double-buffered (important on v7x's 64 MiB VMEM).
        kwargs = {}
        if single_buffer_weights:
            kwargs["pipeline_mode"] = pl.Buffered(1)
        return pl.BlockSpec(shape, lambda b, l: (0,) * len(shape), **kwargs)

    matmul_weights = 2 * D_pad * Di_pad + Di_pad * Di_pad + Di_pad * D_pad
    cost = pl.CostEstimate(
        flops=int(2 * B * L_pad * matmul_weights),
        transcendentals=int(4 * B * L_pad * Di_pad),
        bytes_accessed=int(2 * B * L_pad * D_pad * 4        # x in + out (f32)
                           + B * n_l * 8 * Di_pad * 4       # conv halo rows
                           + 2 * matmul_weights             # bf16 weights
                           + (3 + 1) * Di_pad * 4 + 3 * D_pad * 4),
    )

    return pl.pallas_call(
        kernel,
        out_shape=jax.ShapeDtypeStruct((B, L_pad, D_pad), jnp.float32),
        grid=(B, n_l),
        in_specs=[
            pl.BlockSpec((1, tile_l, D_pad), lambda b, l: (b, l, 0)),     # x tile
            pl.BlockSpec((1, 1, 8, Di_pad), lambda b, l: (b, l, 0, 0)),   # halo x1 rows
            wspec((1, D_pad)),            # LayerNorm gamma
            wspec((1, D_pad)),            # LayerNorm beta
            wspec((D_pad, Di_pad)),       # in_proj W^T, x1 half (bf16)
            wspec((D_pad, Di_pad)),       # in_proj W^T, x2 half (bf16)
            wspec((3, Di_pad)),           # depthwise conv taps
            wspec((Di_pad, Di_pad)),      # dt_proj W^T (bf16)
            wspec((1, Di_pad)),           # dt_proj bias
            wspec((Di_pad, D_pad)),       # out_proj W^T (bf16)
            wspec((1, D_pad)),            # layer_scale
        ],
        out_specs=pl.BlockSpec((1, tile_l, D_pad), lambda b, l: (b, l, 0)),
        compiler_params=pltpu.CompilerParams(
            dimension_semantics=("parallel", "parallel"),
            vmem_limit_bytes=int(vmem_limit)),
        cost_estimate=cost,
    )


def unified_mamba_block(x, params, *, reverse=False, block_l=None):
    """x: (B, L, D) float32. params: dict of weights (see init_params)."""
    B, L, D = x.shape
    d_inner = params["w_dt"].shape[0]

    # lane-dense padding (multiples of 128 on all matmul / lane dims)
    D_pad = _round_up(D, 128)
    Di_pad = _round_up(d_inner, 128)

    # generation-aware VMEM budget and default sequence tile
    cap = _vmem_capacity_bytes()
    vmem_limit = min(96 * 1024 * 1024, max((cap * 3) // 4, 32 * 1024 * 1024))
    if block_l is None:
        block_l = 256 if cap <= 64 * 1024 * 1024 else 512
        block_l = min(block_l, _round_up(L, 8))
        if L % block_l != 0:
            # prefer a tile that divides L -> no pad copy, no per-tile row mask
            for cand in range(block_l, max(block_l // 2, 8) - 1, -8):
                if L % cand == 0:
                    block_l = cand
                    break
    block_l = max(8, (int(block_l) // 8) * 8)
    n_l = pl.cdiv(L, block_l)
    L_pad = n_l * block_l

    f32 = jnp.float32
    x_p = x.astype(f32)
    if L_pad != L or D_pad != D:
        x_p = jnp.pad(x_p, ((0, 0), (0, L_pad - L), (0, D_pad - D)))

    def pad2(w, r, c):
        w = w.astype(f32)
        return jnp.pad(w, ((0, r - w.shape[0]), (0, c - w.shape[1])))

    ln_g = pad2(params["ln_g"], 1, D_pad)
    ln_b = pad2(params["ln_b"], 1, D_pad)

    # split in_proj into the x1 / x2 halves in HBM (no in-kernel column slice)
    w_in = params["w_in"]
    w_in1 = pad2(w_in[:, :d_inner], D_pad, Di_pad).astype(jnp.bfloat16)
    w_in2 = pad2(w_in[:, d_inner:], D_pad, Di_pad).astype(jnp.bfloat16)

    conv_w = params["conv_w"]
    if reverse:
        # flip(conv(flip(z))) == conv with reversed taps (zero pad is symmetric);
        # every other op in the block is position-wise, so this is exact.
        conv_w = conv_w[::-1, :]
    conv_w = pad2(conv_w, 3, Di_pad)

    # --- conv halo: x1 of the row just before / after every tile, computed once
    # here with a 2*n_l row gather + one tiny matmul (no per-tile M=8 dot). ---
    starts = jnp.arange(n_l) * block_l
    prev_idx = jnp.clip(starts - 1, 0, L_pad - 1)
    next_idx = jnp.clip(starts + block_l, 0, L_pad - 1)
    halo_rows = jnp.stack(
        [jnp.take(x_p, prev_idx, axis=1), jnp.take(x_p, next_idx, axis=1)],
        axis=2)                                               # (B, n_l, 2, D_pad)
    mu = jnp.sum(halo_rows, axis=-1, keepdims=True) / D
    ms = jnp.sum(halo_rows * halo_rows, axis=-1, keepdims=True) / D
    hn = (halo_rows - mu) * lax.rsqrt(ms - mu * mu + 1e-5) * ln_g + ln_b
    halo_x1 = jnp.dot(hn.reshape(B * n_l * 2, D_pad).astype(jnp.bfloat16), w_in1,
                      preferred_element_type=f32).reshape(B, n_l, 2, Di_pad)
    valid = jnp.stack([starts > 0, (starts + block_l) < L], axis=-1)   # (n_l, 2)
    halo_x1 = jnp.where(valid[None, :, :, None], halo_x1, 0.0)        # conv zero pad
    halo = jnp.pad(halo_x1, ((0, 0), (0, 0), (0, 6), (0, 0)))  # sublane-pad to 8 rows

    args = (x_p, halo, ln_g, ln_b, w_in1, w_in2, conv_w,
            pad2(params["w_dt"], Di_pad, Di_pad).astype(jnp.bfloat16),
            pad2(params["b_dt"], 1, Di_pad),
            pad2(params["w_out"], Di_pad, D_pad).astype(jnp.bfloat16),
            pad2(params["layer_scale"], 1, D_pad))

    fn = _make_kernel_fn(
        B=B, n_l=n_l, tile_l=block_l, L_pad=L_pad, D_pad=D_pad, Di_pad=Di_pad,
        d_model=D, seq_len=L, vmem_limit=vmem_limit,
        single_buffer_weights=_buffered_weights_supported())
    out = fn(*args)
    return out[:, :L, :D]


def init_params(key, d_model, expand_factor=1.5):
    d_inner = int(d_model * expand_factor)
    ks = jax.random.split(key, 5)
    scale = 0.05
    return {
        "ln_g": jnp.ones((1, d_model), jnp.float32),
        "ln_b": jnp.zeros((1, d_model), jnp.float32),
        # stored pre-transposed: (in_features, out_features)
        "w_in": scale * jax.random.normal(ks[0], (d_model, 2 * d_inner), jnp.float32),
        # depthwise conv weight, tap-major: (3, d_inner)
        "conv_w": scale * jax.random.normal(ks[1], (3, d_inner), jnp.float32),
        "w_dt": scale * jax.random.normal(ks[2], (d_inner, d_inner), jnp.float32),
        "b_dt": scale * jax.random.normal(ks[3], (1, d_inner), jnp.float32),
        "w_out": scale * jax.random.normal(ks[4], (d_inner, d_model), jnp.float32),
        "layer_scale": 0.1 * jnp.ones((1, d_model), jnp.float32),
    }


def _reference(x, params, reverse=False):
    """Pure-JAX f32 reference mirroring the PyTorch forward (eval mode)."""
    residual = x
    mu = jnp.mean(x, axis=-1, keepdims=True)
    var = jnp.mean((x - mu) ** 2, axis=-1, keepdims=True)
    xn = (x - mu) / jnp.sqrt(var + 1e-5) * params["ln_g"][0] + params["ln_b"][0]
    if reverse:
        xn = jnp.flip(xn, axis=1)
    xp = xn @ params["w_in"]
    d_inner = params["w_dt"].shape[0]
    x1, x2 = xp[..., :d_inner], xp[..., d_inner:]
    x1p = jnp.pad(x1, ((0, 0), (1, 1), (0, 0)))
    w = params["conv_w"]
    x1_conv = (x1p[:, :-2] * w[0] + x1p[:, 1:-1] * w[1] + x1p[:, 2:] * w[2])
    x1_ssm = jax.nn.silu(x1_conv)
    dt = jax.nn.softplus(x1_ssm @ params["w_dt"] + params["b_dt"][0])
    x_gated = x1_ssm * jax.nn.sigmoid(dt) * jax.nn.sigmoid(x2)
    out = (x_gated @ params["w_out"]) * params["layer_scale"][0]
    if reverse:
        out = jnp.flip(out, axis=1)
    return out + residual


if __name__ == "__main__":
    B, L, d_model = 2, 16, 32            # d_inner = 48 (padded to 128 lanes in-kernel)
    key = jax.random.PRNGKey(0)
    kx, kp, kx2 = jax.random.split(key, 3)
    x = jax.random.normal(kx, (B, L, d_model), jnp.float32)
    params = init_params(kp, d_model)

    # forward, block_l=8 -> two sequence tiles; exercises the conv-halo path
    out = jax.block_until_ready(unified_mamba_block(x, params, block_l=8))
    ref = _reference(x, params, reverse=False)
    assert out.shape == ref.shape
    assert jnp.max(jnp.abs(out - ref)) < 5e-3, "mismatch vs reference"

    # default (auto) tile size path, single tile
    out_d = jax.block_until_ready(unified_mamba_block(x, params))
    assert jnp.max(jnp.abs(out_d - ref)) < 5e-3, "mismatch (default tile)"

    # reverse=True path (flipped conv taps)
    out_r = jax.block_until_ready(unified_mamba_block(x, params, reverse=True, block_l=8))
    ref_r = _reference(x, params, reverse=True)
    assert jnp.max(jnp.abs(out_r - ref_r)) < 5e-3, "mismatch (reverse)"

    # ragged L (forces in-kernel masking of the padded tail rows in the last tile)
    x3 = jax.random.normal(kx2, (B, 12, d_model), jnp.float32)
    out3 = jax.block_until_ready(unified_mamba_block(x3, params, block_l=8))
    ref3 = _reference(x3, params, reverse=False)
    assert jnp.max(jnp.abs(out3 - ref3)) < 5e-3, "mismatch (ragged L)"

    print("KERNEL_OK")
</pallas_src>

<mosaic_0001>
module attributes {stable_mosaic.version = 11 : i64} {
  func.func @_probe(%arg0: i32, %arg1: memref<8x128xf32, #tpu.memory_space<vmem>>, %arg2: memref<8x128xf32, #tpu.memory_space<vmem>>) attributes {dimension_semantics = [#tpu.dimension_semantics<arbitrary>], iteration_bounds = array<i64: 1>, scalar_prefetch = 0 : i64, scratch_operands = 0 : i64, tpu.core_type = #tpu.core_type<tc>, window_params = [{pipeline_mode = #tpu.pipeline_mode<synchronous>, transform_indices = @transform_0, window_bounds = array<i64: 8, 128>}, {pipeline_mode = #tpu.pipeline_mode<synchronous>, transform_indices = @transform_1, window_bounds = array<i64: 8, 128>}]} {
    %c0 = arith.constant 0 : index
    %c0_0 = arith.constant 0 : index
    %0 = vector.load %arg1[%c0, %c0_0] : memref<8x128xf32, #tpu.memory_space<vmem>>, vector<8x128xf32>
    %cst = arith.constant 1.000000e+00 : f32
    %1 = vector.broadcast %cst : f32 to vector<8x128xf32>
    %2 = arith.addf %0, %1 : vector<8x128xf32>
    %c0_1 = arith.constant 0 : index
    %c0_2 = arith.constant 0 : index
    %3 = vector.load %arg2[%c0_1, %c0_2] : memref<8x128xf32, #tpu.memory_space<vmem>>, vector<8x128xf32>
    tpu.vector_store %arg2[%c0_1, %c0_2], %2 {strides = array<i32>} : memref<8x128xf32, #tpu.memory_space<vmem>>, vector<8x128xf32>,
    return
  }
  func.func @transform_0(%arg0: i32) -> (i32, i32) {
    %c0_i32 = arith.constant 0 : i32
    %c0_i32_0 = arith.constant 0 : i32
    %c0_i32_1 = arith.constant 0 : i32
    return %c0_i32, %c0_i32_0 : i32, i32
  }
  func.func @transform_1(%arg0: i32) -> (i32, i32) {
    %c0_i32 = arith.constant 0 : i32
    %c0_i32_0 = arith.constant 0 : i32
    %c0_i32_1 = arith.constant 0 : i32
    return %c0_i32, %c0_i32_0 : i32, i32
  }
}

module attributes {stable_mosaic.version = 11 : i64} {
  func.func @_mamba_block_kernel(%arg0: i32, %arg1: i32, %arg2: memref<1x8x128xf32, #tpu.memory_space<vmem>>, %arg3: memref<1x1x8x128xf32, #tpu.memory_space<vmem>>, %arg4: memref<1x128xf32, #tpu.memory_space<vmem>>, %arg5: memref<1x128xf32, #tpu.memory_space<vmem>>, %arg6: memref<128x128xbf16, #tpu.memory_space<vmem>>, %arg7: memref<128x128xbf16, #tpu.memory_space<vmem>>, %arg8: memref<3x128xf32, #tpu.memory_space<vmem>>, %arg9: memref<128x128xbf16, #tpu.memory_space<vmem>>, %arg10: memref<1x128xf32, #tpu.memory_space<vmem>>, %arg11: memref<128x128xbf16, #tpu.memory_space<vmem>>, %arg12: memref<1x128xf32, #tpu.memory_space<vmem>>, %arg13: memref<1x8x128xf32, #tpu.memory_space<vmem>>) attributes {dimension_semantics = [#tpu.dimension_semantics<parallel>, #tpu.dimension_semantics<parallel>], iteration_bounds = array<i64: 2, 2>, scalar_prefetch = 0 : i64, scratch_operands = 0 : i64, tpu.core_type = #tpu.core_type<tc>, window_params = [{transform_indices = @transform_0, window_bounds = array<i64: 1, 8, 128>}, {transform_indices = @transform_1, window_bounds = array<i64: 1, 1, 8, 128>}, {pipeline_mode = #tpu.pipeline_mode<synchronous>, transform_indices = @transform_2, window_bounds = array<i64: 1, 128>}, {pipeline_mode = #tpu.pipeline_mode<synchronous>, transform_indices = @transform_3, window_bounds = array<i64: 1, 128>}, {pipeline_mode = #tpu.pipeline_mode<synchronous>, transform_indices = @transform_4, window_bounds = array<i64: 128, 128>}, {pipeline_mode = #tpu.pipeline_mode<synchronous>, transform_indices = @transform_5, window_bounds = array<i64: 128, 128>}, {pipeline_mode = #tpu.pipeline_mode<synchronous>, transform_indices = @transform_6, window_bounds = array<i64: 3, 128>}, {pipeline_mode = #tpu.pipeline_mode<synchronous>, transform_indices = @transform_7, window_bounds = array<i64: 128, 128>}, {pipeline_mode = #tpu.pipeline_mode<synchronous>, transform_indices = @transform_8, window_bounds = array<i64: 1, 128>}, {pipeline_mode = #tpu.pipeline_mode<synchronous>, transform_indices = @transform_9, window_bounds = array<i64: 128, 128>}, {pipeline_mode = #tpu.pipeline_mode<synchronous>, transform_indices = @transform_10, window_bounds = array<i64: 1, 128>}, {transform_indices = @transform_11, window_bounds = array<i64: 1, 8, 128>}]} {
    %c0 = arith.constant 0 : index
    %c0_0 = arith.constant 0 : index
    %c0_1 = arith.constant 0 : index
    %0 = vector.load %arg2[%c0, %c0_0, %c0_1] : memref<1x8x128xf32, #tpu.memory_space<vmem>>, vector<1x8x128xf32>
    %1 = vector.shape_cast %0 : vector<1x8x128xf32> to vector<8x128xf32>
    %cst = arith.constant dense<0.000000e+00> : vector<8xf32>
    %2 = vector.multi_reduction <add>, %1, %cst [1] : vector<8x128xf32> to vector<8xf32>
    %3 = vector.shape_cast %2 : vector<8xf32> to vector<8x1xf32>
    %cst_2 = arith.constant 3.125000e-02 : f32
    %4 = vector.broadcast %cst_2 : f32 to vector<8x1xf32>
    %5 = arith.mulf %3, %4 : vector<8x1xf32>
    %6 = arith.mulf %1, %1 : vector<8x128xf32>
    %cst_3 = arith.constant dense<0.000000e+00> : vector<8xf32>
    %7 = vector.multi_reduction <add>, %6, %cst_3 [1] : vector<8x128xf32> to vector<8xf32>
    %8 = vector.shape_cast %7 : vector<8xf32> to vector<8x1xf32>
    %cst_4 = arith.constant 3.125000e-02 : f32
    %9 = vector.broadcast %cst_4 : f32 to vector<8x1xf32>
    %10 = arith.mulf %8, %9 : vector<8x1xf32>
    %11 = vector.broadcast %5 : vector<8x1xf32> to vector<8x128xf32>
    %12 = arith.subf %1, %11 : vector<8x128xf32>
    %13 = arith.mulf %5, %5 : vector<8x1xf32>
    %14 = arith.subf %10, %13 : vector<8x1xf32>
    %cst_5 = arith.constant 9.99999974E-6 : f32
    %15 = vector.broadcast %cst_5 : f32 to vector<8x1xf32>
    %16 = arith.addf %14, %15 : vector<8x1xf32>
    %17 = math.rsqrt %16 : vector<8x1xf32>
    %18 = vector.broadcast %17 : vector<8x1xf32> to vector<8x128xf32>
    %19 = arith.mulf %12, %18 : vector<8x128xf32>
    %c0_6 = arith.constant 0 : index
    %c0_7 = arith.constant 0 : index
    %20 = vector.load %arg4[%c0_6, %c0_7] : memref<1x128xf32, #tpu.memory_space<vmem>>, vector<1x128xf32>
    %21 = vector.broadcast %20 : vector<1x128xf32> to vector<8x128xf32>
    %22 = arith.mulf %19, %21 : vector<8x128xf32>
    %c0_8 = arith.constant 0 : index
    %c0_9 = arith.constant 0 : index
    %23 = vector.load %arg5[%c0_8, %c0_9] : memref<1x128xf32, #tpu.memory_space<vmem>>, vector<1x128xf32>
    %24 = vector.broadcast %23 : vector<1x128xf32> to vector<8x128xf32>
    %25 = arith.addf %22, %24 : vector<8x128xf32>
    %26 = arith.truncf %25 : vector<8x128xf32> to vector<8x128xbf16>
    %c0_10 = arith.constant 0 : index
    %c0_11 = arith.constant 0 : index
    %27 = vector.load %arg6[%c0_10, %c0_11] : memref<128x128xbf16, #tpu.memory_space<vmem>>, vector<128x128xbf16>
    %cst_12 = arith.constant dense<0.000000e+00> : vector<8x128xf32>
    %28 = tpu.matmul %26, %27, %cst_12 {dimension_numbers = #tpu.dot_dimension_numbers<[1], [0], [0], [1], [0, 0, 1, 1], [], []>} : vector<8x128xbf16>, vector<128x128xbf16>, vector<8x128xf32> -> vector<8x128xf32>
    %c0_13 = arith.constant 0 : index
    %c0_14 = arith.constant 0 : index
    %29 = vector.load %arg7[%c0_13, %c0_14] : memref<128x128xbf16, #tpu.memory_space<vmem>>, vector<128x128xbf16>
    %cst_15 = arith.constant dense<0.000000e+00> : vector<8x128xf32>
    %30 = tpu.matmul %26, %29, %cst_15 {dimension_numbers = #tpu.dot_dimension_numbers<[1], [0], [0], [1], [0, 0, 1, 1], [], []>} : vector<8x128xbf16>, vector<128x128xbf16>, vector<8x128xf32> -> vector<8x128xf32>
    %31 = arith.negf %30 : vector<8x128xf32>
    %32 = math.exp %31 : vector<8x128xf32>
    %cst_16 = arith.constant 1.000000e+00 : f32
    %33 = vector.broadcast %cst_16 : f32 to vector<8x128xf32>
    %34 = arith.addf %33, %32 : vector<8x128xf32>
    %35 = arith.divf %33, %34 : vector<8x128xf32>
    %c0_17 = arith.constant 0 : index
    %c0_18 = arith.constant 0 : index
    %c0_19 = arith.constant 0 : index
    %c0_20 = arith.constant 0 : index
    %36 = vector.load %arg3[%c0_17, %c0_18, %c0_19, %c0_20] : memref<1x1x8x128xf32, #tpu.memory_space<vmem>>, vector<1x1x8x128xf32>
    %37 = vector.shape_cast %36 : vector<1x1x8x128xf32> to vector<8x128xf32>
    %38 = vector.extract_strided_slice %37 {offsets = [0, 0], sizes = [1, 128], strides = [1, 1]} : vector<8x128xf32> to vector<1x128xf32>
    %39 = vector.extract_strided_slice %28 {offsets = [0, 0], sizes = [7, 128], strides = [1, 1]} : vector<8x128xf32> to vector<7x128xf32>
    %40 = tpu.concatenate %38, %39 in 0 : vector<1x128xf32>, vector<7x128xf32> -> vector<8x128xf32>
    %41 = vector.extract_strided_slice %28 {offsets = [1, 0], sizes = [7, 128], strides = [1, 1]} : vector<8x128xf32> to vector<7x128xf32>
    %42 = vector.extract_strided_slice %37 {offsets = [1, 0], sizes = [1, 128], strides = [1, 1]} : vector<8x128xf32> to vector<1x128xf32>
    %43 = tpu.concatenate %41, %42 in 0 : vector<7x128xf32>, vector<1x128xf32> -> vector<8x128xf32>
    %c0_21 = arith.constant 0 : index
    %c0_22 = arith.constant 0 : index
    %44 = vector.load %arg8[%c0_21, %c0_22] : memref<3x128xf32, #tpu.memory_space<vmem>>, vector<3x128xf32>
    %45 = vector.extract_strided_slice %44 {offsets = [0, 0], sizes = [1, 128], strides = [1, 1]} : vector<3x128xf32> to vector<1x128xf32>
    %46 = vector.broadcast %45 : vector<1x128xf32> to vector<8x128xf32>
    %47 = arith.mulf %40, %46 : vector<8x128xf32>
    %48 = vector.extract_strided_slice %44 {offsets = [1, 0], sizes = [1, 128], strides = [1, 1]} : vector<3x128xf32> to vector<1x128xf32>
    %49 = vector.broadcast %48 : vector<1x128xf32> to vector<8x128xf32>
    %50 = arith.mulf %28, %49 : vector<8x128xf32>
    %51 = arith.addf %47, %50 : vector<8x128xf32>
    %52 = vector.extract_strided_slice %44 {offsets = [2, 0], sizes = [1, 128], strides = [1, 1]} : vector<3x128xf32> to vector<1x128xf32>
    %53 = vector.broadcast %52 : vector<1x128xf32> to vector<8x128xf32>
    %54 = arith.mulf %43, %53 : vector<8x128xf32>
    %55 = arith.addf %51, %54 : vector<8x128xf32>
    %56 = arith.negf %55 : vector<8x128xf32>
    %57 = math.exp %56 : vector<8x128xf32>
    %cst_23 = arith.constant 1.000000e+00 : f32
    %58 = vector.broadcast %cst_23 : f32 to vector<8x128xf32>
    %59 = arith.addf %58, %57 : vector<8x128xf32>
    %60 = arith.divf %58, %59 : vector<8x128xf32>
    %61 = arith.mulf %55, %60 : vector<8x128xf32>
    %62 = arith.truncf %61 : vector<8x128xf32> to vector<8x128xbf16>
    %c0_24 = arith.constant 0 : index
    %c0_25 = arith.constant 0 : index
    %63 = vector.load %arg9[%c0_24, %c0_25] : memref<128x128xbf16, #tpu.memory_space<vmem>>, vector<128x128xbf16>
    %cst_26 = arith.constant dense<0.000000e+00> : vector<8x128xf32>
    %64 = tpu.matmul %62, %63, %cst_26 {dimension_numbers = #tpu.dot_dimension_numbers<[1], [0], [0], [1], [0, 0, 1, 1], [], []>} : vector<8x128xbf16>, vector<128x128xbf16>, vector<8x128xf32> -> vector<8x128xf32>
    %c0_27 = arith.constant 0 : index
    %c0_28 = arith.constant 0 : index
    %65 = vector.load %arg10[%c0_27, %c0_28] : memref<1x128xf32, #tpu.memory_space<vmem>>, vector<1x128xf32>
    %66 = vector.broadcast %65 : vector<1x128xf32> to vector<8x128xf32>
    %67 = arith.addf %64, %66 : vector<8x128xf32>
    %cst_29 = arith.constant 3.000000e+01 : f32
    %68 = vector.broadcast %cst_29 : f32 to vector<8x128xf32>
    %69 = arith.minimumf %67, %68 : vector<8x128xf32>
    %70 = math.exp %69 : vector<8x128xf32>
    %cst_30 = arith.constant 1.000000e+00 : f32
    %71 = vector.broadcast %cst_30 : f32 to vector<8x128xf32>
    %72 = arith.addf %71, %70 : vector<8x128xf32>
    %cst_31 = arith.constant 2.000000e+00 : f32
    %73 = vector.broadcast %cst_31 : f32 to vector<8x128xf32>
    %74 = arith.addf %73, %70 : vector<8x128xf32>
    %75 = arith.divf %72, %74 : vector<8x128xf32>
    %76 = arith.mulf %61, %75 : vector<8x128xf32>
    %77 = arith.mulf %76, %35 : vector<8x128xf32>
    %78 = arith.truncf %77 : vector<8x128xf32> to vector<8x128xbf16>
    %c0_32 = arith.constant 0 : index
    %c0_33 = arith.constant 0 : index
    %79 = vector.load %arg11[%c0_32, %c0_33] : memref<128x128xbf16, #tpu.memory_space<vmem>>, vector<128x128xbf16>
    %cst_34 = arith.constant dense<0.000000e+00> : vector<8x128xf32>
    %80 = tpu.matmul %78, %79, %cst_34 {dimension_numbers = #tpu.dot_dimension_numbers<[1], [0], [0], [1], [0, 0, 1, 1], [], []>} : vector<8x128xbf16>, vector<128x128xbf16>, vector<8x128xf32> -> vector<8x128xf32>
    %c0_35 = arith.constant 0 : index
    %c0_36 = arith.constant 0 : index
    %81 = vector.load %arg12[%c0_35, %c0_36] : memref<1x128xf32, #tpu.memory_space<vmem>>, vector<1x128xf32>
    %82 = vector.broadcast %81 : vector<1x128xf32> to vector<8x128xf32>
    %83 = arith.mulf %80, %82 : vector<8x128xf32>
    %84 = arith.addf %83, %1 : vector<8x128xf32>
    %c0_37 = arith.constant 0 : index
    %c0_38 = arith.constant 0 : index
    %c0_39 = arith.constant 0 : index
    %85 = vector.load %arg13[%c0_37, %c0_38, %c0_39] : memref<1x8x128xf32, #tpu.memory_space<vmem>>, vector<1x8x128xf32>
    %86 = vector.shape_cast %85 : vector<1x8x128xf32> to vector<8x128xf32>
    %87 = vector.shape_cast %84 : vector<8x128xf32> to vector<1x8x128xf32>
    tpu.vector_store %arg13[%c0_37, %c0_38, %c0_39], %87 {strides = array<i32>} : memref<1x8x128xf32, #tpu.memory_space<vmem>>, vector<1x8x128xf32>,
    return
  }
  func.func @transform_0(%arg0: i32, %arg1: i32) -> (i32, i32, i32) {
    %c0_i32 = arith.constant 0 : i32
    %c0_i32_0 = arith.constant 0 : i32
    return %arg0, %arg1, %c0_i32 : i32, i32, i32
  }
  func.func @transform_1(%arg0: i32, %arg1: i32) -> (i32, i32, i32, i32) {
    %c0_i32 = arith.constant 0 : i32
    %c0_i32_0 = arith.constant 0 : i32
    %c0_i32_1 = arith.constant 0 : i32
    return %arg0, %arg1, %c0_i32, %c0_i32_0 : i32, i32, i32, i32
  }
  func.func @transform_2(%arg0: i32, %arg1: i32) -> (i32, i32) {
    %c0_i32 = arith.constant 0 : i32
    %c0_i32_0 = arith.constant 0 : i32
    %c0_i32_1 = arith.constant 0 : i32
    return %c0_i32, %c0_i32_0 : i32, i32
  }
  func.func @transform_3(%arg0: i32, %arg1: i32) -> (i32, i32) {
    %c0_i32 = arith.constant 0 : i32
    %c0_i32_0 = arith.constant 0 : i32
    %c0_i32_1 = arith.constant 0 : i32
    return %c0_i32, %c0_i32_0 : i32, i32
  }
  func.func @transform_4(%arg0: i32, %arg1: i32) -> (i32, i32) {
    %c0_i32 = arith.constant 0 : i32
    %c0_i32_0 = arith.constant 0 : i32
    %c0_i32_1 = arith.constant 0 : i32
    return %c0_i32, %c0_i32_0 : i32, i32
  }
  func.func @transform_5(%arg0: i32, %arg1: i32) -> (i32, i32) {
    %c0_i32 = arith.constant 0 : i32
    %c0_i32_0 = arith.constant 0 : i32
    %c0_i32_1 = arith.constant 0 : i32
    return %c0_i32, %c0_i32_0 : i32, i32
  }
  func.func @transform_6(%arg0: i32, %arg1: i32) -> (i32, i32) {
    %c0_i32 = arith.constant 0 : i32
    %c0_i32_0 = arith.constant 0 : i32
    %c0_i32_1 = arith.constant 0 : i32
    return %c0_i32, %c0_i32_0 : i32, i32
  }
  func.func @transform_7(%arg0: i32, %arg1: i32) -> (i32, i32) {
    %c0_i32 = arith.constant 0 : i32
    %c0_i32_0 = arith.constant 0 : i32
    %c0_i32_1 = arith.constant 0 : i32
    return %c0_i32, %c0_i32_0 : i32, i32
  }
  func.func @transform_8(%arg0: i32, %arg1: i32) -> (i32, i32) {
    %c0_i32 = arith.constant 0 : i32
    %c0_i32_0 = arith.constant 0 : i32
    %c0_i32_1 = arith.constant 0 : i32
    return %c0_i32, %c0_i32_0 : i32, i32
  }
  func.func @transform_9(%arg0: i32, %arg1: i32) -> (i32, i32) {
    %c0_i32 = arith.constant 0 : i32
    %c0_i32_0 = arith.constant 0 : i32
    %c0_i32_1 = arith.constant 0 : i32
    return %c0_i32, %c0_i32_0 : i32, i32
  }
  func.func @transform_10(%arg0: i32, %arg1: i32) -> (i32, i32) {
    %c0_i32 = arith.constant 0 : i32
    %c0_i32_0 = arith.constant 0 : i32
    %c0_i32_1 = arith.constant 0 : i32
    return %c0_i32, %c0_i32_0 : i32, i32
  }
  func.func @transform_11(%arg0: i32, %arg1: i32) -> (i32, i32, i32) {
    %c0_i32 = arith.constant 0 : i32
    %c0_i32_0 = arith.constant 0 : i32
    return %arg0, %arg1, %c0_i32 : i32, i32, i32
  }
}

</mosaic_0001>

<bundles_post_ra>
// kernel: tpu_custom_call.1
= control target key start
LH: loop header
LB: loop body
LE: loop exit
PB: predicated region body
PF: predicated region fallthrough
CT: control target
= control target key end

     0   :  { %6 = vsyncpa [#allocation3], 0  ;;  %s115_s0 = inlined_call_operand.hbm [shape: f32[8,128], index: 0, kind: input, shape index: {}]   ;;  %s116_s1 = inlined_call_operand.hbm [shape: f32[8,128], index: 1, kind: output, shape index: {}]  }
   0x1   :  { %7 = vsyncpa [#allocation4], 0  ;;  %s13_s8 = sshll.u32 %s115_s0, 4  ;;  %s97_s9 = smov [#allocation2]   ;;  %s14_s8 = int_to_ptr.hbm [resolvable:$true] %s13_s8 }
   0x2   :  { %s15_s10 = sshll.u32 %s97_s9, 4  ;;  %s16_s10 = int_to_ptr.vmem [resolvable:$true] %s15_s10 }
   0x3   :  { %18 = dma.hbm_to_vmem [thread:$0]  %s14_s8, 128, %s16_s10, [#allocation3]  }
   0x4   :  { %93 = dma.done.wait [#allocation3], 128  }
   0x5   :  { %94 = vsyncadd [#allocation3], 4294967168  ;;  %s98_s11 = smov [#allocation5]   ;;  %s33_s15 = sshll.u32 %s116_s1, 4  ;;  %v23_v0 = vld [vmem:[#allocation2] sm:$0xff]  ;;  %s34_s15 = int_to_ptr.hbm [resolvable:$true] %s33_s15 }
   0x6   :  { %s31_s12 = sshll.u32 %s98_s11, 4  ;;  %v24_v1 = vadd.f32 1.0, %v23_v0  ;;  %s32_s12 = int_to_ptr.vmem [resolvable:$true] %s31_s12 }
   0x8   :  { %25 = vst [vmem:[#allocation5] sm:$0xff] %v24_v1 }
   0x9   :  { %36 = dma.vmem_to_hbm [thread:$0]  %s32_s12, 128, %s34_s15, [#allocation4]  }
   0xa   :  { %95 = dma.done.wait [#allocation4], 128  }
   0xb   :  { %96 = vsyncadd [#allocation4], 4294967168 }
   0xc   :  { %41 = vsyncpa [#allocation3], 1 }
   0xd   :  { %42 = vsyncpa [#allocation4], 1 }

// kernel: tpu_custom_call.1
= control target key start
LH: loop header
LB: loop body
LE: loop exit
PB: predicated region body
PF: predicated region fallthrough
CT: control target
= control target key end

     0   :  { %s2135_s0 = inlined_call_operand.hbm [shape: f32[2,16,128], index: 0, kind: input, shape index: {}]   ;;  %s2136_s1 = inlined_call_operand.hbm [shape: f32[2,2,8,128], index: 1, kind: input, shape index: {}]   ;;  %s2137_s2 = inlined_call_operand.vmem [shape: f32[1,128], index: 2, kind: input, shape index: {}]   ;;  %s2138_s3 = inlined_call_operand.hbm [shape: f32[1,128], index: 3, kind: input, shape index: {}]   ;;  %s2139_s4 = inlined_call_operand.hbm [shape: bf16[128,128], index: 4, kind: input, shape index: {}]   ;;  %s2140_s5 = inlined_call_operand.hbm [shape: bf16[128,128], index: 5, kind: input, shape index: {}]   ;;  %s2141_s6 = inlined_call_operand.vmem [shape: f32[3,128], index: 6, kind: input, shape index: {}]   ;;  %s2142_s7 = inlined_call_operand.hbm [shape: bf16[128,128], index: 7, kind: input, shape index: {}]   ;;  %s2143_s8 = inlined_call_operand.vmem [shape: f32[1,128], index: 8, kind: input, shape index: {}]   ;;  %s2144_s9 = inlined_call_operand.hbm [shape: bf16[128,128], index: 9, kind: input, shape index: {}]   ;;  %s2145_s10 = inlined_call_operand.vmem [shape: f32[1,128], index: 10, kind: input, shape index: {}]   ;;  %s2146_s11 = inlined_call_operand.hbm [shape: f32[2,16,128], index: 11, kind: output, shape index: {}]  }
   0x1   :  { %2156 = sst [smem:[#allocation29_spill]] %s2138_s3 }
   0x2   :  { %2157 = sst [smem:[#allocation30_spill]] %s2139_s4 }
   0x3   :  { %2158 = sst [smem:[#allocation31_spill]] %s2140_s5 }
   0x4   :  { %2159 = sst [smem:[#allocation32_spill]] %s2142_s7 }
   0x5   :  { %2160 = sst [smem:[#allocation33_spill]] %s2144_s9 }
   0x6   :  { %2161 = sst [smem:[#allocation34_spill]] %s2145_s10 }
   0x7   :  { %2162 = sst [smem:[#allocation35_spill]] %s2146_s11 }
   0x8   :  { %16 = vsyncpa [#allocation3], 0 }
   0x9   :  { %18 = vsyncpa [#allocation3 + $0x1], 0 }
   0xa   :  { %19 = vsyncpa [#allocation6], 0 }
   0xb   :  { %21 = vsyncpa [#allocation6 + $0x1], 0 }
   0xc   :  { %22 = vsyncpa [#allocation9], 0 }
   0xd   :  { %23 = vsyncpa [#allocation12], 0 }
   0xe   :  { %24 = vsyncpa [#allocation4], 0 }
   0xf   :  { %26 = vsyncpa [#allocation4 + $0x1], 0  ;;  %s1896_s17 = smov 0   ;;  %s1898_s18 = smov 0  }
  0x10   :  { %s1900_s19 = smov 0   ;;  %s1902_s20 = smov 0  }
  0x11   :  { %s1904_s21 = smov 0   ;;  %s1906_s22 = smov 0  }
  0x12   :  { %s1908_s23 = smov 0   ;;  %s1910_s24 = smov 0  }
  0x13 LB: > { %2163 = sst [smem:[#allocation21_spill]] %s1799_s17  ;;  %s1937_s25 = sadd.s32 4294967295, %s1827_s24   ;;  %s1827_s24 = sphi %s1910_s24, %s32_s24   ;;  %s1823_s23 = sphi %s1908_s23, %s2191_s23   ;;  %s1819_s22 = sphi %s1906_s22, %s2190_s22   ;;  %s1815_s21 = sphi %s1904_s21, %s2189_s21   ;;  %s1811_s20 = sphi %s1902_s20, %s2188_s20   ;;  %s1807_s19 = sphi %s1900_s19, %s2194_s19   ;;  %s1803_s18 = sphi %s1898_s18, %s2193_s18   ;;  %s1799_s17 = sphi %s1896_s17, %s2192_s17  }
  0x14   : > { %2164 = sst [smem:[#allocation22_spill]] %s1811_s20  ;;  %p1160_p0 = scmp.ge.s32.totalorder %s1827_s24, 1 }
  0x15   : > { %2165 = sst [smem:[#allocation23_spill]] %s1819_s22  ;;  %p67_p1 = scmp.eq.s32.totalorder %s1937_s25, 0 }
  0x16   : > { %2166 = sst [smem:[#allocation24_spill]] %s1823_s23  ;;  %p322_p2 = scmp.lt.s32.totalorder %s1827_s24, 5 }
  0x17   : > { %s2167_s3 = sld [smem:[#allocation29_spill]]  ;;  %s1829_s30 = smov [#allocation7]  }
  0x18   : > { %p1945_p3 = pnand %p1160_p0, %p322_p2  ;;  %s339_s12 = sshll.u32 %s1829_s30, 4  ;;  %s340_s12 = int_to_ptr.vmem [resolvable:$true] %s339_s12 }
  0x19   : > { %s2169_s4 = sld [smem:[#allocation30_spill]]  ;;  %s1830_s26 = smov [#allocation8]  }
  0x1a   : > { %p1375_p4 = pneg %p1945_p3  ;;  %s350_s27 = sshll.u32 %s1830_s26, 4  ;;  %s351_s27 = int_to_ptr.vmem [resolvable:$true] %s350_s27 }
  0x1b   : > { %s1831_s30 = smov 64   ;;  %s2171_s7 = sld [smem:[#allocation32_spill]] }
  0x1c   : > { %p1956_p5 = pnand %p1375_p4, %p67_p1  ;;  %s1833_s11 = smov [#allocation11]  }
  0x1d   : > { %s337_s28 = sshll.u32 %s2167_s3, 4  ;;  %s1832_s3 = smov 4   ;;  %s338_s28 = int_to_ptr.hbm [resolvable:$true] %s337_s28 }
  0x1e   : > { %1378 = dma.hbm_to_vmem [thread:$0]  (!%p1956_p5), %s338_s28, 16, %s340_s12, [#allocation6]  }
  0x1f   : > { %s348_s15 = sshll.u32 %s2169_s4, 4  ;;  %s381_s10 = sshll.u32 %s1833_s11, 4  ;;  %s349_s15 = int_to_ptr.hbm [resolvable:$true] %s348_s15  ;;  %s382_s10 = int_to_ptr.vmem [resolvable:$true] %s381_s10 }
  0x20   : > { %1381 = dma.hbm_to_vmem [thread:$0]  (!%p1956_p5), %s349_s15, 1024, %s351_s27, [#allocation9], %s1831_s30, %s1831_s30, %s1832_s3  }
  0x21   : > { %s379_s4 = sshll.u32 %s2171_s7, 4  ;;  %s2172_s5 = sld [smem:[#allocation31_spill]]  ;;  %s380_s4 = int_to_ptr.hbm [resolvable:$true] %s379_s4 }
  0x22   : > { %1387 = dma.hbm_to_vmem [thread:$0]  (!%p1956_p5), %s380_s4, 1024, %s382_s10, [#allocation12], %s1831_s30, %s1831_s30, %s1832_s3  }
  0x23   : > { %s1834_s12 = smov [#allocation10]   ;;  %s2173_s9 = sld [smem:[#allocation33_spill]] }
  0x24   : > { %s364_s15 = sshll.u32 %s1834_s12, 4  ;;  %s1835_s20 = smov [#allocation13]   ;;  %s365_s15 = int_to_ptr.vmem [resolvable:$true] %s364_s15 }
  0x25   : > { %s398_s4 = sshll.u32 %s1835_s20, 4  ;;  %s1159_s10 = sadd.s32 4294967294, %s1827_s24   ;;  %s399_s4 = int_to_ptr.vmem [resolvable:$true] %s398_s4 }
  0x26   : > { %s41_s14 = sadd.s32 1, %s1819_s22  ;;  %s44_s26 = sadd.s32 1, %s1823_s23 }
  0x27   : > { %s362_s28 = sshll.u32 %s2172_s5, 4  ;;  %p42_p6 = scmp.ge.s32.totalorder %s41_s14, 2  ;;  %s363_s28 = int_to_ptr.hbm [resolvable:$true] %s362_s28 }
  0x28   : > { %1384 = dma.hbm_to_vmem [thread:$0]  (!%p1956_p5), %s363_s28, 1024, %s365_s15, [#allocation9], %s1831_s30, %s1831_s30, %s1832_s3  }
  0x29   : > { %s396_s11 = sshll.u32 %s2173_s9, 4  ;;  %s53_s12 = sadd.s32 1, %s1807_s19  ;;  %s397_s11 = int_to_ptr.hbm [resolvable:$true] %s396_s11 }
  0x2a   : > { %1390 = dma.hbm_to_vmem [thread:$0]  (!%p1956_p5), %s397_s11, 1024, %s399_s4, [#allocation12], %s1831_s30, %s1831_s30, %s1832_s3  }
  0x2b   : > { %p60_p7 = scmp.ne.s32.totalorder %s1807_s19, %s1803_s18  ;;  %p61_p8 = scmp.eq.s32.totalorder %s1827_s24, 0 }
  0x2c   : > { %s2196_s14 = smov (%p42_p6, %s41_s14), 0  ;;  %s2198_s26 = smov (!%p42_p6, %s44_s26), %s1823_s23 }
  0x2d   : > { %2174 = sst [smem:[#allocation25_spill]] %s2196_s14  ;;  %s49_s28 = ssub.s32 %s1819_s22, %s2196_s14 }
  0x2e   : > { %p1991_p9 = por %p61_p8, %p60_p7  ;;  %p46_p10 = scmp.ge.s32.totalorder %s2198_s26, 2 }
  0x2f   : > { %p66_p11 = scmp.ne.s32.totalorder %s1803_s18, %s1799_s17  ;;  %p309_p12 = scmp.eq.s32.totalorder %s1937_s25, 3 }
  0x30   : > { %p315_p13 = scmp.eq.s32.totalorder %s1159_s10, 3  ;;  %s2200_s26 = smov (%p46_p10, %s2198_s26), 0 }
  0x31   : > { %2176 = sst [smem:[#allocation26_spill]] %s2200_s26  ;;  %p2002_p0 = por %p67_p1, %p66_p11 }
  0x32   : > { %p2006_p2 = por %p309_p12, %p60_p7  ;;  %s48_s15 = ssub.s32 %s1823_s23, %s2200_s26 }
  0x33   : > { %p2012_p4 = por %p315_p13, %p66_p11  ;;  %s50_s13 = sor.u32 %s49_s28, %s48_s15 }
  0x34   : > { %s2178_s30 = scalar_select %p2006_p2, 1, 0 }
  0x35   : > { %s2180_s27 = scalar_select %p2012_p4, 1, 0 }
  0x36   : > { %2179 = sst [smem:[#allocation27_spill]] %s2178_s30  ;;  %p1407_p5 = scmp.lt.s32.totalorder %s1827_s24, 4 }
  0x37   : > { %2181 = sst [smem:[#allocation28_spill]] %s2180_s27  ;;  %p51_p6 = scmp.eq.s32.totalorder %s50_s13, 0 }
  0x38   : > { %s415_s11 = sand.u32 1, %s1807_s19   ;;  %s1168_s10 = sshll.u32 %s1823_s23, 1 }
  0x39   : > { %s1167_s20 = sshll.u32 %s415_s11, 3  ;;  %s423_s5 = sadd.s32 %s1819_s22, %s1168_s10 }
  0x3a   : > { %s2019_s4 = scalar_select %p51_p6, %s1807_s19, %s53_s12  }
  0x3b   : > { %s419_s7 = scalar_lea.vmem [#allocation2], %s1167_s20  ;;  %s1169_s14 = sshll.u32 %s423_s5, 3 }
  0x3c   : > { %s429_s9 = sshll.u32 %s419_s7, 4  ;;  %s425_s30 = scalar_lea.hbm %s2135_s0, %s1169_s14  ;;  %s430_s9 = int_to_ptr.vmem [resolvable:$true] %s429_s9 }
  0x3d   : > { %p1392_p7 = pnand %p1407_p5, %p1991_p9  ;;  %s427_s28 = sshll.u32 %s425_s30, 4  ;;  %s428_s28 = int_to_ptr.hbm [resolvable:$true] %s427_s28 }
  0x3e   : > { %s416_s15 = scalar_lea.sflag [#allocation3], %s415_s11  ;;  %s446_s12 = scalar_lea.hbm %s2136_s1, %s1169_s14 }
  0x3f   : > { %1394 = dma.hbm_to_vmem [thread:$0]  (!%p1392_p7), %s428_s28, 128, %s430_s9, %s416_s15  }
  0x40   : > { %s436_s23 = sand.u32 1, %s1827_s24   ;;  %s448_s10 = sshll.u32 %s446_s12, 4  ;;  %s449_s10 = int_to_ptr.hbm [resolvable:$true] %s448_s10 }
  0x41   : > { %s440_s7 = scalar_lea.vmem [#allocation5], %s1167_s20  ;;  %s437_s22 = scalar_lea.sflag [#allocation6], %s436_s23 }
  0x42   : > { %s450_s5 = sshll.u32 %s440_s7, 4  ;;  %459 = sbr.rel (%p1945_p3) target bundleno = 717 (0x2cd), region = 64  ;;  %s451_s5 = int_to_ptr.vmem [resolvable:$true] %s450_s5 }
  0x43   : > { %1397 = dma.hbm_to_vmem [thread:$0]  (!%p1392_p7), %s449_s10, 128, %s451_s5, %s437_s22  }
  0x44   : > { %s2035_s17 = sand.u32 (!%p1945_p3), 1, %s1803_s18  }
  0x45   : > { %s2038_s9 = sshll.u32 (!%p1945_p3), %s2035_s17, 3  ;;  %s462_s14 = scalar_lea.sflag (!%p1945_p3), [#allocation3], %s2035_s17 }
  0x46   : > { %s465_s26 = scalar_lea.vmem (!%p1945_p3), [#allocation2], %s2038_s9 }
  0x47   : > { %1774 = dma.done.wait (%p2002_p0), %s462_s14, 128  }
  0x48   : > { %1776 = vsyncadd (%p2002_p0), %s462_s14, 4294967168  ;;  %s471_s22 = sand.u32 1, %s1937_s25   ;;  %s475_s29 = scalar_lea.vmem [#allocation5], %s2038_s9 }
  0x49   : > { %s472_s23 = scalar_lea.sflag [#allocation6], %s471_s22 }
  0x4a   : > { %1778 = dma.done.wait (%p2002_p0), %s472_s23, 128  }
  0x4b   : > { %1780 = vsyncadd (%p2002_p0), %s472_s23, 4294967168 }
  0x4c   : > { %1782 = dma.done.wait (%p67_p1), [#allocation6], 16  }
  0x4d   : > { %1784 = vsyncadd (%p67_p1), [#allocation6], 4294967280 }
  0x4e   : > { %1786 = dma.done.wait (%p67_p1), [#allocation9], 2048  }
  0x4f   : > { %1788 = vsyncadd (%p67_p1), [#allocation9], 4294965248 }
  0x50   : > { %1790 = dma.done.wait (%p67_p1), [#allocation12], 2048  }
  0x51   : > { %1792 = vsyncadd (%p67_p1), [#allocation12], 4294965248  ;;  %v2064_v0 = vld [vmem:[%s465_s26] sm:$0xff]  ;;  %v1323_v4 = vld [vmem:[#allocation8 + $0x30] sm:$0xff]  ;;  %vm756_vm3 = vcmask 1040384   ;;  %vm763_vm4 = vcmask 1046528  }
  0x52   : > { %546 = vadd.xlane.f32.xlu0 %v2064_v0  ;;  %v549_v1 = vmul.f32 %v2064_v0, %v2064_v0  ;;  %v1324_v2 = vld [vmem:[#allocation8 + $0x38] sm:$0xff]  ;;  %v1331_v5 = vld [vmem:[#allocation10 + $0x30] sm:$0xff]  ;;  %v1322_v6 = vld [vmem:[#allocation8 + $0x28] sm:$0xff]  ;;  %s2182_s20 = sld [smem:[#allocation22_spill]]  ;;  %s1313_s28 = sshll.u32 %s1815_s21, 1 }
  0x53   : > { %v1332_v3 = vld [vmem:[#allocation10 + $0x38] sm:$0xff]  ;;  %643 = vmatpush.bf16.msra.mxu0 %v1324_v2  ;;  %v1330_v7 = vld [vmem:[#allocation10 + $0x28] sm:$0xff]  ;;  %v1321_v8 = vld [vmem:[#allocation8 + $0x20] sm:$0xff]  ;;  %s2183_s7 = sld [smem:[#allocation34_spill]]  ;;  %s984_s21 = scalar_lea.sflag [#allocation4], %s2035_s17 }
  0x54   : > { %720 = vmatpush.bf16.msra.mxu1 %v1332_v3  ;;  %v1329_v9 = vld [vmem:[#allocation10 + $0x20] sm:$0xff]  ;;  %v1320_v10 = vld [vmem:[#allocation8 + $0x18] sm:$0xff]  ;;  %v1319_v12 = vld [vmem:[#allocation8 + $0x10] sm:$0xff]  ;;  %s2184_s26 = sld [smem:[#allocation35_spill]] }
  0x55   : > { %v1328_v11 = vld [vmem:[#allocation10 + $0x18] sm:$0xff]  ;;  %v1327_v13 = vld [vmem:[#allocation10 + $0x10] sm:$0xff]  ;;  %v1318_v14 = vld [vmem:[#allocation8 + $0x8] sm:$0xff] }
  0x56   : > { %v1326_v15 = vld [vmem:[#allocation10 + $0x8] sm:$0xff]  ;;  %v1317_v17 = vld [vmem:[#allocation8] sm:$0xff]  ;;  %v1485_v32 = vld [vmem:[%s2137_s2] ss:$0 sm:$0xff] }
  0x57   : > { %644 = vmatpush.bf16.msra.mxu0 %v1323_v4  ;;  %v1325_v18 = vld [vmem:[#allocation10] sm:$0xff]  ;;  %v1486_v35 = vld [vmem:[#allocation7] ss:$0 sm:$0xff]  ;;  %v1339_v40 = vld [vmem:[#allocation11 + $0x30] sm:$0xff] }
  0x58   : > { %721 = vmatpush.bf16.msra.mxu1 %v1331_v5  ;;  %v1340_v39 = vld [vmem:[#allocation11 + $0x38] sm:$0xff]  ;;  %v1338_v41 = vld [vmem:[#allocation11 + $0x28] sm:$0xff]  ;;  %v1337_v42 = vld [vmem:[#allocation11 + $0x20] sm:$0xff]  ;;  %s994_s15 = sadd.s32 %s2182_s20, %s1313_s28 }
  0x59   : > { %863 = vmatpush.bf16.msra.mxu2 %v1340_v39  ;;  %v1336_v43 = vld [vmem:[#allocation11 + $0x18] sm:$0xff]  ;;  %v1335_v44 = vld [vmem:[#allocation11 + $0x10] sm:$0xff]  ;;  %v1334_v48 = vld [vmem:[#allocation11 + $0x8] sm:$0xff]  ;;  %s1314_s13 = sshll.u32 %s994_s15, 3 }
  0x5a   : > { %550 = vadd.xlane.f32.xlu0 %v549_v1  ;;  %v752_v45 = vld [vmem:[%s475_s29] sm:$0xff]  ;;  %v765_v46 = vld [vmem:[%s2141_s6] sm:$0x7]  ;;  %s996_s23 = scalar_lea.hbm %s2184_s26, %s1314_s13  ;;  %s544_s29 = scalar_lea.vmem [#allocation14], %s2038_s9 }
  0x5b   : > { %645 = vmatpush.bf16.msra.mxu0 %v1322_v6  ;;  %v761_v47 = vrot.slane %v752_v45, 2  ;;  %v766_v50 = vperm.slane %v765_v46, 0  ;;  %v768_v51 = vperm.slane %v765_v46, 1  ;;  %v771_v55 = vperm.slane %v765_v46, 2  ;;  %v1333_v58 = vld [vmem:[#allocation11] sm:$0xff]  ;;  %s998_s25 = sshll.u32 %s544_s29, 4  ;;  %s999_s25 = int_to_ptr.vmem [resolvable:$true] %s998_s25 }
  0x5c   : > { %722 = vmatpush.bf16.msra.mxu1 %v1330_v7  ;;  %s1000_s16 = sshll.u32 %s996_s23, 4  ;;  %s1733_s9 = scalar_lea.hbm %s2184_s26, 32  ;;  %s1001_s16 = int_to_ptr.hbm [resolvable:$true] %s1000_s16 }
  0x5d   : > { %864 = vmatpush.bf16.msra.mxu2 %v1339_v40  ;;  %s1727_s3 = sshra.s32 %s1001_s16, 4  ;;  %s1728_s3 = int_to_ptr.hbm [resolvable:$true] %s1727_s3 }
  0x5e   : > { %s1729_s30 = scalar_lea.hbm %s1728_s3, 8  ;;  %p1734_p9 = scmp.lt.s32.totalorder %s1728_s3, %s2184_s26 }
  0x5f   : > { %646 = vmatpush.bf16.msra.mxu0 %v1321_v8  ;;  %p1730_p1 = scmp.ne.s32.totalorder %s1728_s3, %s1729_s30  ;;  %p1735_p10 = scmp.lt.s32.totalorder %s1733_s9, %s1729_s30 }
  0x60   : > { %723 = vmatpush.bf16.msra.mxu1 %v1329_v9 }
  0x61   : > { %865 = vmatpush.bf16.msra.mxu2 %v1338_v41  ;;  %p1731_p3 = pnand %p1730_p1, %p2006_p2  ;;  %p1736_p11 = por %p1735_p10, %p1734_p9 }
  0x63   : > { %647 = vmatpush.bf16.msra.mxu0 %v1320_v10  ;;  %p1732_p8 = pneg %p1731_p3 }
  0x64   : > { %724 = vmatpush.bf16.msra.mxu1 %v1328_v11 }
  0x65   : > { %866 = vmatpush.bf16.msra.mxu2 %v1337_v42  ;;  %p1737_p12 = pnand %p1736_p11, %p1732_p8 }
  0x67   : > { %648 = vmatpush.bf16.msra.mxu0 %v1319_v12 }
  0x68   : > { %725 = vmatpush.bf16.msra.mxu1 %v1327_v13 }
  0x69   : > { %867 = vmatpush.bf16.msra.mxu2 %v1336_v43 }
  0x6b   : > { %649 = vmatpush.bf16.msra.mxu0 %v1318_v14 }
  0x6c   : > { %726 = vmatpush.bf16.msra.mxu1 %v1326_v15 }
  0x6d   : > { %868 = vmatpush.bf16.msra.mxu2 %v1335_v44 }
  0x6f   : > { %650 = vmatpush.bf16.msra.mxu0 %v1317_v17 }
  0x70   : > { %727 = vmatpush.bf16.msra.mxu1 %v1325_v18  ;;  %v1348_v18 = vld [vmem:[#allocation13 + $0x38] sm:$0xff] }
  0x71   : > { %869 = vmatpush.bf16.msra.mxu2 %v1334_v48  ;;  %963 = vmatpush.bf16.msra.mxu3 %v1348_v18 }
  0x75   : > { %870 = vmatpush.bf16.msra.mxu2 %v1333_v58 }
  0xc5   : > { %v547_v16 = vpop.xlane.xlu0 %546 }
  0xc6   : > { %v548_v19 = vmul.f32 0.03125, %v547_v16 }
  0xc8   : > { %v554_v21 = vmul.f32 %v548_v19, %v548_v19  ;;  %v553_v31 = vsub.f32 %v2064_v0, %v548_v19  ;;  %v1347_v19 = vld [vmem:[#allocation13 + $0x30] sm:$0xff] }
  0xc9   : > { %964 = vmatpush.bf16.msra.mxu3 %v1347_v19 }
  0xcd   : > { %v551_v20 = vpop.xlane.xlu0 %550 }
  0xce   : > { %v552_v22 = vmul.f32 0.03125, %v551_v20  ;;  %v1346_v20 = vld [vmem:[#allocation13 + $0x28] sm:$0xff] }
  0xcf   : > { %965 = vmatpush.bf16.msra.mxu3 %v1346_v20 }
  0xd0   : > { %v555_v23 = vsub.f32 %v552_v22, %v554_v21  ;;  %v1345_v21 = vld [vmem:[#allocation13 + $0x20] sm:$0xff]  ;;  %v1344_v22 = vld [vmem:[#allocation13 + $0x18] sm:$0xff] }
  0xd2   : > { %v556_v24 = vadd.f32 1e-05, %v555_v23 }
  0xd3   : > { %966 = vmatpush.bf16.msra.mxu3 %v1345_v21 }
  0xd4   : > { %1489 = vrsqrt.f32 %v556_v24  ;;  %vm563_vm1 = vweird.f32 %v556_v24 }
  0xd7   : > { %967 = vmatpush.bf16.msra.mxu3 %v1344_v22 }
  0xda   : > { %v1490_v25 = vpop.eup %1489 }
  0xdb   : > { %v558_v26 = vmul.f32 %v1490_v25, %v556_v24  ;;  %vm564_vm0 = vweird.f32 %v1490_v25  ;;  %v1343_v24 = vld [vmem:[#allocation13 + $0x10] sm:$0xff] }
  0xdc   : > { %vm565_vm2 = vmor %vm563_vm1, %vm564_vm0  ;;  %968 = vmatpush.bf16.msra.mxu3 %v1343_v24 }
  0xdd   : > { %v559_v27 = vmul.f32 %v1490_v25, %v558_v26  ;;  %v1342_v26 = vld [vmem:[#allocation13 + $0x8] sm:$0xff] }
  0xdf   : > { %v560_v28 = vmul.f32 0.5, %v559_v27 }
  0xe0   : > { %969 = vmatpush.bf16.msra.mxu3 %v1342_v26 }
  0xe1   : > { %v561_v29 = vsub.f32 1.5, %v560_v28 }
  0xe3   : > { %v562_v30 = vmul.f32 %v1490_v25, %v561_v29 }
  0xe5   : > { %v566_v33 = vsel %vm565_vm2, %v1490_v25, %v562_v30  ;;  %v1487_v25 = vld [vmem:[%s2143_s8] ss:$0 sm:$0xff]  ;;  %v1341_v30 = vld [vmem:[#allocation13] sm:$0xff] }
  0xe6   : > { %v567_v34 = vmul.f32 %v566_v33, %v553_v31  ;;  %970 = vmatpush.bf16.msra.mxu3 %v1341_v30 }
  0xe8   : > { %v572_v36 = vmul.f32 %v1485_v32, %v567_v34 }
  0xea   : > { %v577_v37 = vadd.f32 %v1486_v35, %v572_v36 }
  0xec   : > { %v578_v38 = vpack.c.bf16 %v577_v37, %v577_v37 }
  0xee   : > { %651 = vmatmul.bf16.vlgmr.msra.gmra.mxu0 %v578_v38  ;;  %728 = vmatmul.bf16.vlgmr.msra.gmra.mxu1 %v578_v38 }
 0x16b   : > { %v652_v49 = vpop.f32.mrf.mxu0  ;;  %v729_v52 = vpop.f32.mrf.mxu1 }
 0x16c   : > { %v754_v53 = vrot.slane %v652_v49, 7  ;;  %v758_v54 = vrot.slane %v652_v49, 1  ;;  %v769_v60 = vmul.f32 %v768_v51, %v652_v49  ;;  %v1246_v23 = vmul.f32 -1.442695, %v729_v52 }
 0x16e   : > { %v757_v56 = vsel %vm756_vm3, %v752_v45, %v754_v53  ;;  %v764_v57 = vsel %vm763_vm4, %v758_v54, %v761_v47 }
 0x16f   : > { %v767_v59 = vmul.f32 %v766_v50, %v757_v56  ;;  %v772_v62 = vmul.f32 %v771_v55, %v764_v57 }
 0x171   : > { %v770_v61 = vadd.f32 %v769_v60, %v767_v59 }
 0x173   : > { %v654_v63 = vpop.f32.mrf.mxu0  ;;  %v731_v1 = vpop.f32.mrf.mxu1  ;;  %v773_v2 = vadd.f32 %v772_v62, %v770_v61  ;;  %v1488_v62 = vld [vmem:[%s2183_s7] ss:$0 sm:$0xff] }
 0x175   : > { %v1247_v3 = vmul.f32 -1.442695, %v773_v2 }
 0x177   : > { %1491 = vpow2.f32 %v1247_v3 }
 0x17d   : > { %v1492_v4 = vpop.eup %1491 }
 0x17e   : > { %v777_v5 = vadd.f32 1.0, %v1492_v4 }
 0x180   : > { %1493 = vrcp.f32 %v777_v5  ;;  %v789_v9 = vand.u32 2147483648, %v777_v5  ;;  %v787_v11 = vand.u32 2147483647, %v777_v5  ;;  %vm783_vm6 = vweird.f32 %v777_v5 }
 0x181   : > { %1495 = vpow2.f32 %v1246_v23 }
 0x182   : > { %v790_v13 = vor.u32 1.1754944e-38, %v789_v9  ;;  %vm788_vm8 = vcmp.eq.f32.partialorder %v787_v11, 8.507059e+37 }
 0x186   : > { %v1494_v6 = vpop.eup %1493 }
 0x187   : > { %v779_v7 = vmul.f32 %v1494_v6, %v777_v5  ;;  %vm784_vm5 = vweird.f32 %v1494_v6  ;;  %v1496_v28 = vpop.eup %1495 }
 0x188   : > { %vm785_vm7 = vmor %vm783_vm6, %vm784_vm5  ;;  %v736_v32 = vadd.f32 1.0, %v1496_v28 }
 0x189   : > { %v780_v8 = vsub.f32 1.0, %v779_v7 }
 0x18a   : > { %vm742_vm12 = vweird.f32 %v736_v32  ;;  %v748_v49 = vand.u32 2147483648, %v736_v32  ;;  %v746_v51 = vand.u32 2147483647, %v736_v32 }
 0x18b   : > { %v781_v10 = vmul.f32 %v1494_v6, %v780_v8 }
 0x18c   : > { %v749_v57 = vor.u32 1.1754944e-38, %v748_v49  ;;  %vm747_vm0 = vcmp.eq.f32.partialorder %v746_v51, 8.507059e+37 }
 0x18d   : > { %v782_v12 = vadd.f32 %v1494_v6, %v781_v10 }
 0x18f   : > { %v786_v14 = vsel %vm785_vm7, %v1494_v6, %v782_v12 }
 0x190   : > { %v791_v15 = vsel %vm788_vm8, %v790_v13, %v786_v14 }
 0x191   : > { %v2078_v16 = vmul.f32 %v791_v15, %v773_v2 }
 0x193   : > { %v794_v17 = vpack.c.bf16 %v2078_v16, %v2078_v16 }
 0x195   : > { %871 = vmatmul.bf16.vlgmr.msra.gmra.mxu2 %v794_v17 }
 0x218   : > { %v872_v27 = vpop.f32.mrf.mxu2 }
 0x219   : > { %v873_v29 = vadd.f32 %v1487_v25, %v872_v27 }
 0x21b   : > { %v876_v31 = vmin.f32 %v873_v29, 30.0 }
 0x21d   : > { %v877_v33 = vmul.f32 1.442695, %v876_v31 }
 0x21f   : > { %1497 = vpow2.f32 %v877_v33 }
 0x220   : > { %1499 = vrcp.f32 %v736_v32  ;;  %v874_v34 = vpop.f32.mrf.mxu2 }
 0x225   : > { %v1498_v35 = vpop.eup %1497 }
 0x226   : > { %v1500_v36 = vpop.eup %1499  ;;  %v880_v37 = vadd.f32 2.0, %v1498_v35  ;;  %v879_v52 = vadd.f32 1.0, %v1498_v35 }
 0x227   : > { %v738_v38 = vmul.f32 %v1500_v36, %v736_v32  ;;  %vm743_vm10 = vweird.f32 %v1500_v36 }
 0x228   : > { %1501 = vrcp.f32 %v880_v37  ;;  %v892_v44 = vand.u32 2147483648, %v880_v37  ;;  %v890_v46 = vand.u32 2147483647, %v880_v37  ;;  %vm886_vm11 = vweird.f32 %v880_v37  ;;  %vm744_vm15 = vmor %vm742_vm12, %vm743_vm10 }
 0x229   : > { %v739_v39 = vsub.f32 1.0, %v738_v38 }
 0x22a   : > { %v893_v50 = vor.u32 1.1754944e-38, %v892_v44  ;;  %vm891_vm14 = vcmp.eq.f32.partialorder %v890_v46, 8.507059e+37 }
 0x22b   : > { %v740_v42 = vmul.f32 %v1500_v36, %v739_v39 }
 0x22d   : > { %v741_v47 = vadd.f32 %v1500_v36, %v740_v42 }
 0x22e   : > { %v1502_v40 = vpop.eup %1501 }
 0x22f   : > { %v882_v41 = vmul.f32 %v1502_v40, %v880_v37  ;;  %vm887_vm9 = vweird.f32 %v1502_v40  ;;  %v745_v55 = vsel %vm744_vm15, %v1500_v36, %v741_v47 }
 0x230   : > { %vm888_vm13 = vmor %vm886_vm11, %vm887_vm9  ;;  %v750_v59 = vsel %vm747_vm0, %v749_v57, %v745_v55 }
 0x231   : > { %v883_v43 = vsub.f32 1.0, %v882_v41 }
 0x233   : > { %v884_v45 = vmul.f32 %v1502_v40, %v883_v43 }
 0x235   : > { %v885_v48 = vadd.f32 %v1502_v40, %v884_v45 }
 0x237   : > { %v889_v53 = vsel %vm888_vm13, %v1502_v40, %v885_v48 }
 0x238   : > { %v894_v54 = vsel %vm891_vm14, %v893_v50, %v889_v53 }
 0x239   : > { %v895_v56 = vmul.f32 %v894_v54, %v879_v52 }
 0x23b   : > { %v896_v58 = vmul.f32 %v895_v56, %v2078_v16 }
 0x23d   : > { %v897_v60 = vmul.f32 %v896_v58, %v750_v59 }
 0x23f   : > { %v898_v61 = vpack.c.bf16 %v897_v60, %v897_v60 }
 0x241   : > { %971 = vmatmul.bf16.vlgmr.msra.gmra.mxu3 %v898_v61 }
 0x2c4   : > { %v972_v63 = vpop.f32.mrf.mxu3 }
 0x2c5   : > { %v980_v1 = vmul.f32 %v1488_v62, %v972_v63 }
 0x2c7   : > { %v981_v2 = vadd.f32 %v980_v1, %v2064_v0 }
 0x2c9   : > { %982 = vst [vmem:[%s544_s29] sm:$0xff] %v981_v2 }
 0x2ca   : > { %1740 = shalt.err (!%p1737_p12)
}
 0x2cb   : > { %1373 = dma.vmem_to_hbm [thread:$0]  (%p2006_p2), %s999_s25, 128, %s1001_s16, %s984_s21  }
 0x2cc   : > { %v974_v0 = vpop.f32.mrf.mxu3 }
 0x2cd PF: > { %s2186_s17 = sld [smem:[#allocation21_spill]]  ;;  %p1413_p13 = scmp.ge.s32.totalorder %s1827_s24, 2 }
 0x2cf   : > { %p1399_p0 = pnand %p1413_p13, %p2012_p4 }
 0x2d1   : > { %p1400_p5 = pneg %p1399_p0 }
 0x2d3   : > { %s1012_s13 = sand.u32 1, %s2186_s17  }
 0x2d4   : > { %s1013_s12 = scalar_lea.sflag [#allocation4], %s1012_s13 }
 0x2d5   : > { %1794 = dma.done.wait (%p1400_p5), %s1013_s12, 128  }
 0x2d6   : > { %1796 = vsyncadd (%p1400_p5), %s1013_s12, 4294967168  ;;  %s32_s24 = sadd.s32 1, %s1827_s24   ;;  %s2188_s20 = sld [smem:[#allocation23_spill]] }
 0x2d7   : > { %p29_p6 = scmp.ge.s32.totalorder %s32_s24, 6   ;;  %s2189_s21 = sld [smem:[#allocation24_spill]] }
 0x2d8   : > { %s2190_s22 = sld [smem:[#allocation25_spill]]  ;;  %s2192_s17 = smov %s1803_s18 }
 0x2d9   : > { %s2191_s23 = sld [smem:[#allocation26_spill]]  ;;  %s2193_s18 = smov %s1807_s19 }
 0x2da   : > { %s2194_s19 = smov %s2019_s4  ;;  %31 = sbr.rel (!%p29_p6) target bundleno = 19 (0x13), region = 142 }
 0x2df   :  { %1019 = vsyncpa [#allocation3], 1 }
 0x2e0   :  { %1021 = vsyncpa [#allocation3 + $0x1], 1 }
 0x2e1   :  { %1022 = vsyncpa [#allocation6], 1 }
 0x2e2   :  { %1024 = vsyncpa [#allocation6 + $0x1], 1 }
 0x2e3   :  { %1025 = vsyncpa [#allocation9], 1 }
 0x2e4   :  { %1026 = vsyncpa [#allocation12], 1 }
 0x2e5   :  { %1027 = vsyncpa [#allocation4], 1 }
 0x2e6   :  { %1029 = vsyncpa [#allocation4 + $0x1], 1 }

</bundles_post_ra>
